<compile_context>
chip_gen: v7x
topology: tpu7x:2x2x1
jax: 0.10.0
libtpu: 0.0.40
codegen_flags: <defaults>
</compile_context>

<pallas_src>
import jax
import jax.numpy as jnp
from jax import lax
from jax.experimental import pallas as pl
from jax.experimental.pallas import tpu as pltpu


def lstm_kernel(x_ref, wih_ref, whh_ref, b_ref, out_ref, gx_ref):
    # Shapes (static): x_ref (T*B, F), wih (F, 4H), whh (H, 4H), b (1, 4H),
    # out (B, H), gx scratch (T*B, 4H).
    B, H = out_ref.shape
    TB = x_ref.shape[0]
    T = TB // B

    # --- Hoisted input projection: one MXU matmul for all time steps, bias
    # folded in.  Off the recurrent critical path.
    gx_ref[...] = (
        jnp.dot(x_ref[...], wih_ref[...], preferred_element_type=jnp.float32)
        + b_ref[...]
    )

    whh = whh_ref[...]                       # (H, 4H), kept in vregs

    def step(t, carry):
        h, c = carry                         # (B, H), (B, H)
        row = pl.multiple_of(t * B, B)
        # gates = gates_x[t] + h_prev @ W_hh^T        -> (B, 4H)
        gates = gx_ref[pl.ds(row, B), :] + jnp.dot(
            h, whh, preferred_element_type=jnp.float32)

        # Full-width activations (4H = 128 lanes): two EUP passes total.
        sig = jax.nn.sigmoid(gates)          # (B, 4H)
        tnh = jnp.tanh(gates)                # (B, 4H)

        i_g = sig[:, 0 * H:1 * H]
        f_g = sig[:, 1 * H:2 * H]
        g_g = tnh[:, 2 * H:3 * H]
        o_g = sig[:, 3 * H:4 * H]

        c_new = f_g * c + i_g * g_g
        h_new = o_g * jnp.tanh(c_new)
        return h_new, c_new

    h0 = jnp.zeros((B, H), jnp.float32)
    c0 = jnp.zeros((B, H), jnp.float32)
    h_T, _ = lax.fori_loop(0, T, step, (h0, c0), unroll=True)

    # out = relu(h_T)
    out_ref[...] = jnp.maximum(h_T, 0.0)


def lstm_forward(x, w_ih, w_hh, b_ih, b_hh):
    """x: (T, B, F) float32. Returns (1, B*H) float32 (relu(h_T) flattened)."""
    T, B, F = x.shape
    H = w_hh.shape[1]
    assert w_ih.shape == (4 * H, F) and w_hh.shape == (4 * H, H)

    x2d = jnp.asarray(x, jnp.float32).reshape(T * B, F)    # row = t*B + b
    wih_t = jnp.asarray(w_ih.T, jnp.float32)               # (F, 4H)
    whh_t = jnp.asarray(w_hh.T, jnp.float32)               # (H, 4H)
    b = (b_ih + b_hh).reshape(1, 4 * H).astype(jnp.float32)

    out = pl.pallas_call(
        lstm_kernel,
        out_shape=jax.ShapeDtypeStruct((B, H), jnp.float32),
        grid_spec=pltpu.PrefetchScalarGridSpec(
            num_scalar_prefetch=0,
            grid=(1,),                                      # single invocation
            in_specs=[
                pl.BlockSpec((T * B, F), lambda i: (0, 0)),      # x (all steps)
                pl.BlockSpec((F, 4 * H), lambda i: (0, 0)),      # W_ih^T
                pl.BlockSpec((H, 4 * H), lambda i: (0, 0)),      # W_hh^T
                pl.BlockSpec((1, 4 * H), lambda i: (0, 0)),      # bias
            ],
            out_specs=pl.BlockSpec((B, H), lambda i: (0, 0)),
            scratch_shapes=[
                pltpu.VMEM((T * B, 4 * H), jnp.float32),   # hoisted gates_x
            ],
        ),
        compiler_params=pltpu.CompilerParams(
            dimension_semantics=("arbitrary",)),
    )(x2d, wih_t, whh_t, b)

    # out = out[-1]; relu; view(1, -1)  (relu already applied in-kernel)
    return out.reshape(1, -1)


def lstm_reference(x, w_ih, w_hh, b_ih, b_hh):
    """Pure-JAX reference matching torch.nn.LSTM (1 layer, zero init state)."""
    T, B, F = x.shape
    H = w_hh.shape[1]
    b = b_ih + b_hh

    def step(carry, x_t):
        h, c = carry
        gates = x_t @ w_ih.T + h @ w_hh.T + b
        i_g = jax.nn.sigmoid(gates[:, 0 * H:1 * H])
        f_g = jax.nn.sigmoid(gates[:, 1 * H:2 * H])
        g_g = jnp.tanh(gates[:, 2 * H:3 * H])
        o_g = jax.nn.sigmoid(gates[:, 3 * H:4 * H])
        c = f_g * c + i_g * g_g
        h = o_g * jnp.tanh(c)
        return (h, c), h

    h0 = jnp.zeros((B, H), jnp.float32)
    (h, c), _ = lax.scan(step, (h0, h0), x)
    return jnp.maximum(h, 0.0).reshape(1, -1)


if __name__ == "__main__":
    # Small shapes consistent with the module: seq=8, batch=2, num_features=32
    # (original module uses num_features=225; hidden_features == in_features).
    T, B, F = 8, 2, 32
    H = F

    key = jax.random.PRNGKey(0)
    kx, k1, k2, k3, k4 = jax.random.split(key, 5)

    # PyTorch-style init: U(-1/sqrt(H), 1/sqrt(H))
    bound = 1.0 / jnp.sqrt(jnp.float32(H))
    w_ih = jax.random.uniform(k1, (4 * H, F), jnp.float32, -bound, bound)
    w_hh = jax.random.uniform(k2, (4 * H, H), jnp.float32, -bound, bound)
    b_ih = jax.random.uniform(k3, (4 * H,), jnp.float32, -bound, bound)
    b_hh = jax.random.uniform(k4, (4 * H,), jnp.float32, -bound, bound)

    x = jax.random.normal(kx, (T, B, F), jnp.float32)

    out = lstm_forward(x, w_ih, w_hh, b_ih, b_hh)
    out = jax.block_until_ready(out)

    ref = lstm_reference(x, w_ih, w_hh, b_ih, b_hh)
    assert out.shape == (1, B * H), out.shape
    assert jnp.allclose(out, ref, atol=1e-5, rtol=1e-5), "mismatch vs reference"

    print("KERNEL_OK")
</pallas_src>

<mosaic_0001>
module attributes {stable_mosaic.version = 11 : i64} {
  func.func @lstm_kernel(%arg0: i32, %arg1: memref<16x32xf32, #tpu.memory_space<vmem>>, %arg2: memref<32x128xf32, #tpu.memory_space<vmem>>, %arg3: memref<32x128xf32, #tpu.memory_space<vmem>>, %arg4: memref<1x128xf32, #tpu.memory_space<vmem>>, %arg5: memref<2x32xf32, #tpu.memory_space<vmem>>, %arg6: memref<16x128xf32, #tpu.memory_space<vmem>>) attributes {dimension_semantics = [#tpu.dimension_semantics<arbitrary>], iteration_bounds = array<i64: 1>, scalar_prefetch = 0 : i64, scratch_operands = 1 : i64, tpu.core_type = #tpu.core_type<tc>, window_params = [{pipeline_mode = #tpu.pipeline_mode<synchronous>, transform_indices = @transform_0, window_bounds = array<i64: 16, 32>}, {pipeline_mode = #tpu.pipeline_mode<synchronous>, transform_indices = @transform_1, window_bounds = array<i64: 32, 128>}, {pipeline_mode = #tpu.pipeline_mode<synchronous>, transform_indices = @transform_2, window_bounds = array<i64: 32, 128>}, {pipeline_mode = #tpu.pipeline_mode<synchronous>, transform_indices = @transform_3, window_bounds = array<i64: 1, 128>}, {pipeline_mode = #tpu.pipeline_mode<synchronous>, transform_indices = @transform_4, window_bounds = array<i64: 2, 32>}]} {
    %c0 = arith.constant 0 : index
    %c0_0 = arith.constant 0 : index
    %0 = vector.load %arg1[%c0, %c0_0] : memref<16x32xf32, #tpu.memory_space<vmem>>, vector<16x32xf32>
    %c0_1 = arith.constant 0 : index
    %c0_2 = arith.constant 0 : index
    %1 = vector.load %arg2[%c0_1, %c0_2] : memref<32x128xf32, #tpu.memory_space<vmem>>, vector<32x128xf32>
    %cst = arith.constant dense<0.000000e+00> : vector<16x128xf32>
    %2 = tpu.matmul %0, %1, %cst {dimension_numbers = #tpu.dot_dimension_numbers<[1], [0], [0], [1], [0, 0, 1, 1], [], []>} : vector<16x32xf32>, vector<32x128xf32>, vector<16x128xf32> -> vector<16x128xf32>
    %c0_3 = arith.constant 0 : index
    %c0_4 = arith.constant 0 : index
    %3 = vector.load %arg4[%c0_3, %c0_4] : memref<1x128xf32, #tpu.memory_space<vmem>>, vector<1x128xf32>
    %4 = vector.broadcast %3 : vector<1x128xf32> to vector<16x128xf32>
    %5 = arith.addf %2, %4 : vector<16x128xf32>
    %c0_5 = arith.constant 0 : index
    %c0_6 = arith.constant 0 : index
    %6 = vector.load %arg6[%c0_5, %c0_6] : memref<16x128xf32, #tpu.memory_space<vmem>>, vector<16x128xf32>
    tpu.vector_store %arg6[%c0_5, %c0_6], %5 {strides = array<i32>} : memref<16x128xf32, #tpu.memory_space<vmem>>, vector<16x128xf32>,
    %c0_7 = arith.constant 0 : index
    %c0_8 = arith.constant 0 : index
    %7 = vector.load %arg3[%c0_7, %c0_8] : memref<32x128xf32, #tpu.memory_space<vmem>>, vector<32x128xf32>
    %cst_9 = arith.constant 0.000000e+00 : f32
    %8 = vector.broadcast %cst_9 : f32 to vector<2x32xf32>
    %cst_10 = arith.constant 0.000000e+00 : f32
    %9 = vector.broadcast %cst_10 : f32 to vector<2x32xf32>
    %c0_i32 = arith.constant 0 : i32
    %c2_i32 = arith.constant 2 : i32
    %10 = arith.muli %c0_i32, %c2_i32 : i32
    %11 = tpu.assume_multiple %10, 2 : i32
    %12 = arith.index_cast %11 : i32 to index
    %c0_11 = arith.constant 0 : index
    %13 = vector.load %arg6[%12, %c0_11] : memref<16x128xf32, #tpu.memory_space<vmem>>, vector<2x128xf32>
    %cst_12 = arith.constant dense<0.000000e+00> : vector<2x128xf32>
    %14 = tpu.matmul %8, %7, %cst_12 {dimension_numbers = #tpu.dot_dimension_numbers<[1], [0], [0], [1], [0, 0, 1, 1], [], []>} : vector<2x32xf32>, vector<32x128xf32>, vector<2x128xf32> -> vector<2x128xf32>
    %15 = arith.addf %13, %14 : vector<2x128xf32>
    %16 = arith.negf %15 : vector<2x128xf32>
    %17 = math.exp %16 : vector<2x128xf32>
    %cst_13 = arith.constant 1.000000e+00 : f32
    %18 = vector.broadcast %cst_13 : f32 to vector<2x128xf32>
    %19 = arith.addf %18, %17 : vector<2x128xf32>
    %20 = arith.divf %18, %19 : vector<2x128xf32>
    %21 = math.tanh %15 : vector<2x128xf32>
    %22 = vector.extract_strided_slice %20 {offsets = [0, 0], sizes = [2, 32], strides = [1, 1]} : vector<2x128xf32> to vector<2x32xf32>
    %23 = vector.extract_strided_slice %20 {offsets = [0, 32], sizes = [2, 32], strides = [1, 1]} : vector<2x128xf32> to vector<2x32xf32>
    %24 = vector.extract_strided_slice %21 {offsets = [0, 64], sizes = [2, 32], strides = [1, 1]} : vector<2x128xf32> to vector<2x32xf32>
    %25 = vector.extract_strided_slice %20 {offsets = [0, 96], sizes = [2, 32], strides = [1, 1]} : vector<2x128xf32> to vector<2x32xf32>
    %26 = arith.mulf %23, %9 : vector<2x32xf32>
    %27 = arith.mulf %22, %24 : vector<2x32xf32>
    %28 = arith.addf %26, %27 : vector<2x32xf32>
    %29 = math.tanh %28 : vector<2x32xf32>
    %30 = arith.mulf %25, %29 : vector<2x32xf32>
    %c1_i32 = arith.constant 1 : i32
    %c2_i32_14 = arith.constant 2 : i32
    %31 = arith.muli %c1_i32, %c2_i32_14 : i32
    %32 = tpu.assume_multiple %31, 2 : i32
    %33 = arith.index_cast %32 : i32 to index
    %c0_15 = arith.constant 0 : index
    %34 = vector.load %arg6[%33, %c0_15] : memref<16x128xf32, #tpu.memory_space<vmem>>, vector<2x128xf32>
    %cst_16 = arith.constant dense<0.000000e+00> : vector<2x128xf32>
    %35 = tpu.matmul %30, %7, %cst_16 {dimension_numbers = #tpu.dot_dimension_numbers<[1], [0], [0], [1], [0, 0, 1, 1], [], []>} : vector<2x32xf32>, vector<32x128xf32>, vector<2x128xf32> -> vector<2x128xf32>
    %36 = arith.addf %34, %35 : vector<2x128xf32>
    %37 = arith.negf %36 : vector<2x128xf32>
    %38 = math.exp %37 : vector<2x128xf32>
    %cst_17 = arith.constant 1.000000e+00 : f32
    %39 = vector.broadcast %cst_17 : f32 to vector<2x128xf32>
    %40 = arith.addf %39, %38 : vector<2x128xf32>
    %41 = arith.divf %39, %40 : vector<2x128xf32>
    %42 = math.tanh %36 : vector<2x128xf32>
    %43 = vector.extract_strided_slice %41 {offsets = [0, 0], sizes = [2, 32], strides = [1, 1]} : vector<2x128xf32> to vector<2x32xf32>
    %44 = vector.extract_strided_slice %41 {offsets = [0, 32], sizes = [2, 32], strides = [1, 1]} : vector<2x128xf32> to vector<2x32xf32>
    %45 = vector.extract_strided_slice %42 {offsets = [0, 64], sizes = [2, 32], strides = [1, 1]} : vector<2x128xf32> to vector<2x32xf32>
    %46 = vector.extract_strided_slice %41 {offsets = [0, 96], sizes = [2, 32], strides = [1, 1]} : vector<2x128xf32> to vector<2x32xf32>
    %47 = arith.mulf %44, %28 : vector<2x32xf32>
    %48 = arith.mulf %43, %45 : vector<2x32xf32>
    %49 = arith.addf %47, %48 : vector<2x32xf32>
    %50 = math.tanh %49 : vector<2x32xf32>
    %51 = arith.mulf %46, %50 : vector<2x32xf32>
    %c2_i32_18 = arith.constant 2 : i32
    %c2_i32_19 = arith.constant 2 : i32
    %52 = arith.muli %c2_i32_18, %c2_i32_19 : i32
    %53 = tpu.assume_multiple %52, 2 : i32
    %54 = arith.index_cast %53 : i32 to index
    %c0_20 = arith.constant 0 : index
    %55 = vector.load %arg6[%54, %c0_20] : memref<16x128xf32, #tpu.memory_space<vmem>>, vector<2x128xf32>
    %cst_21 = arith.constant dense<0.000000e+00> : vector<2x128xf32>
    %56 = tpu.matmul %51, %7, %cst_21 {dimension_numbers = #tpu.dot_dimension_numbers<[1], [0], [0], [1], [0, 0, 1, 1], [], []>} : vector<2x32xf32>, vector<32x128xf32>, vector<2x128xf32> -> vector<2x128xf32>
    %57 = arith.addf %55, %56 : vector<2x128xf32>
    %58 = arith.negf %57 : vector<2x128xf32>
    %59 = math.exp %58 : vector<2x128xf32>
    %cst_22 = arith.constant 1.000000e+00 : f32
    %60 = vector.broadcast %cst_22 : f32 to vector<2x128xf32>
    %61 = arith.addf %60, %59 : vector<2x128xf32>
    %62 = arith.divf %60, %61 : vector<2x128xf32>
    %63 = math.tanh %57 : vector<2x128xf32>
    %64 = vector.extract_strided_slice %62 {offsets = [0, 0], sizes = [2, 32], strides = [1, 1]} : vector<2x128xf32> to vector<2x32xf32>
    %65 = vector.extract_strided_slice %62 {offsets = [0, 32], sizes = [2, 32], strides = [1, 1]} : vector<2x128xf32> to vector<2x32xf32>
    %66 = vector.extract_strided_slice %63 {offsets = [0, 64], sizes = [2, 32], strides = [1, 1]} : vector<2x128xf32> to vector<2x32xf32>
    %67 = vector.extract_strided_slice %62 {offsets = [0, 96], sizes = [2, 32], strides = [1, 1]} : vector<2x128xf32> to vector<2x32xf32>
    %68 = arith.mulf %65, %49 : vector<2x32xf32>
    %69 = arith.mulf %64, %66 : vector<2x32xf32>
    %70 = arith.addf %68, %69 : vector<2x32xf32>
    %71 = math.tanh %70 : vector<2x32xf32>
    %72 = arith.mulf %67, %71 : vector<2x32xf32>
    %c3_i32 = arith.constant 3 : i32
    %c2_i32_23 = arith.constant 2 : i32
    %73 = arith.muli %c3_i32, %c2_i32_23 : i32
    %74 = tpu.assume_multiple %73, 2 : i32
    %75 = arith.index_cast %74 : i32 to index
    %c0_24 = arith.constant 0 : index
    %76 = vector.load %arg6[%75, %c0_24] : memref<16x128xf32, #tpu.memory_space<vmem>>, vector<2x128xf32>
    %cst_25 = arith.constant dense<0.000000e+00> : vector<2x128xf32>
    %77 = tpu.matmul %72, %7, %cst_25 {dimension_numbers = #tpu.dot_dimension_numbers<[1], [0], [0], [1], [0, 0, 1, 1], [], []>} : vector<2x32xf32>, vector<32x128xf32>, vector<2x128xf32> -> vector<2x128xf32>
    %78 = arith.addf %76, %77 : vector<2x128xf32>
    %79 = arith.negf %78 : vector<2x128xf32>
    %80 = math.exp %79 : vector<2x128xf32>
    %cst_26 = arith.constant 1.000000e+00 : f32
    %81 = vector.broadcast %cst_26 : f32 to vector<2x128xf32>
    %82 = arith.addf %81, %80 : vector<2x128xf32>
    %83 = arith.divf %81, %82 : vector<2x128xf32>
    %84 = math.tanh %78 : vector<2x128xf32>
    %85 = vector.extract_strided_slice %83 {offsets = [0, 0], sizes = [2, 32], strides = [1, 1]} : vector<2x128xf32> to vector<2x32xf32>
    %86 = vector.extract_strided_slice %83 {offsets = [0, 32], sizes = [2, 32], strides = [1, 1]} : vector<2x128xf32> to vector<2x32xf32>
    %87 = vector.extract_strided_slice %84 {offsets = [0, 64], sizes = [2, 32], strides = [1, 1]} : vector<2x128xf32> to vector<2x32xf32>
    %88 = vector.extract_strided_slice %83 {offsets = [0, 96], sizes = [2, 32], strides = [1, 1]} : vector<2x128xf32> to vector<2x32xf32>
    %89 = arith.mulf %86, %70 : vector<2x32xf32>
    %90 = arith.mulf %85, %87 : vector<2x32xf32>
    %91 = arith.addf %89, %90 : vector<2x32xf32>
    %92 = math.tanh %91 : vector<2x32xf32>
    %93 = arith.mulf %88, %92 : vector<2x32xf32>
    %c4_i32 = arith.constant 4 : i32
    %c2_i32_27 = arith.constant 2 : i32
    %94 = arith.muli %c4_i32, %c2_i32_27 : i32
    %95 = tpu.assume_multiple %94, 2 : i32
    %96 = arith.index_cast %95 : i32 to index
    %c0_28 = arith.constant 0 : index
    %97 = vector.load %arg6[%96, %c0_28] : memref<16x128xf32, #tpu.memory_space<vmem>>, vector<2x128xf32>
    %cst_29 = arith.constant dense<0.000000e+00> : vector<2x128xf32>
    %98 = tpu.matmul %93, %7, %cst_29 {dimension_numbers = #tpu.dot_dimension_numbers<[1], [0], [0], [1], [0, 0, 1, 1], [], []>} : vector<2x32xf32>, vector<32x128xf32>, vector<2x128xf32> -> vector<2x128xf32>
    %99 = arith.addf %97, %98 : vector<2x128xf32>
    %100 = arith.negf %99 : vector<2x128xf32>
    %101 = math.exp %100 : vector<2x128xf32>
    %cst_30 = arith.constant 1.000000e+00 : f32
    %102 = vector.broadcast %cst_30 : f32 to vector<2x128xf32>
    %103 = arith.addf %102, %101 : vector<2x128xf32>
    %104 = arith.divf %102, %103 : vector<2x128xf32>
    %105 = math.tanh %99 : vector<2x128xf32>
    %106 = vector.extract_strided_slice %104 {offsets = [0, 0], sizes = [2, 32], strides = [1, 1]} : vector<2x128xf32> to vector<2x32xf32>
    %107 = vector.extract_strided_slice %104 {offsets = [0, 32], sizes = [2, 32], strides = [1, 1]} : vector<2x128xf32> to vector<2x32xf32>
    %108 = vector.extract_strided_slice %105 {offsets = [0, 64], sizes = [2, 32], strides = [1, 1]} : vector<2x128xf32> to vector<2x32xf32>
    %109 = vector.extract_strided_slice %104 {offsets = [0, 96], sizes = [2, 32], strides = [1, 1]} : vector<2x128xf32> to vector<2x32xf32>
    %110 = arith.mulf %107, %91 : vector<2x32xf32>
    %111 = arith.mulf %106, %108 : vector<2x32xf32>
    %112 = arith.addf %110, %111 : vector<2x32xf32>
    %113 = math.tanh %112 : vector<2x32xf32>
    %114 = arith.mulf %109, %113 : vector<2x32xf32>
    %c5_i32 = arith.constant 5 : i32
    %c2_i32_31 = arith.constant 2 : i32
    %115 = arith.muli %c5_i32, %c2_i32_31 : i32
    %116 = tpu.assume_multiple %115, 2 : i32
    %117 = arith.index_cast %116 : i32 to index
    %c0_32 = arith.constant 0 : index
    %118 = vector.load %arg6[%117, %c0_32] : memref<16x128xf32, #tpu.memory_space<vmem>>, vector<2x128xf32>
    %cst_33 = arith.constant dense<0.000000e+00> : vector<2x128xf32>
    %119 = tpu.matmul %114, %7, %cst_33 {dimension_numbers = #tpu.dot_dimension_numbers<[1], [0], [0], [1], [0, 0, 1, 1], [], []>} : vector<2x32xf32>, vector<32x128xf32>, vector<2x128xf32> -> vector<2x128xf32>
    %120 = arith.addf %118, %119 : vector<2x128xf32>
    %121 = arith.negf %120 : vector<2x128xf32>
    %122 = math.exp %121 : vector<2x128xf32>
    %cst_34 = arith.constant 1.000000e+00 : f32
    %123 = vector.broadcast %cst_34 : f32 to vector<2x128xf32>
    %124 = arith.addf %123, %122 : vector<2x128xf32>
    %125 = arith.divf %123, %124 : vector<2x128xf32>
    %126 = math.tanh %120 : vector<2x128xf32>
    %127 = vector.extract_strided_slice %125 {offsets = [0, 0], sizes = [2, 32], strides = [1, 1]} : vector<2x128xf32> to vector<2x32xf32>
    %128 = vector.extract_strided_slice %125 {offsets = [0, 32], sizes = [2, 32], strides = [1, 1]} : vector<2x128xf32> to vector<2x32xf32>
    %129 = vector.extract_strided_slice %126 {offsets = [0, 64], sizes = [2, 32], strides = [1, 1]} : vector<2x128xf32> to vector<2x32xf32>
    %130 = vector.extract_strided_slice %125 {offsets = [0, 96], sizes = [2, 32], strides = [1, 1]} : vector<2x128xf32> to vector<2x32xf32>
    %131 = arith.mulf %128, %112 : vector<2x32xf32>
    %132 = arith.mulf %127, %129 : vector<2x32xf32>
    %133 = arith.addf %131, %132 : vector<2x32xf32>
    %134 = math.tanh %133 : vector<2x32xf32>
    %135 = arith.mulf %130, %134 : vector<2x32xf32>
    %c6_i32 = arith.constant 6 : i32
    %c2_i32_35 = arith.constant 2 : i32
    %136 = arith.muli %c6_i32, %c2_i32_35 : i32
    %137 = tpu.assume_multiple %136, 2 : i32
    %138 = arith.index_cast %137 : i32 to index
    %c0_36 = arith.constant 0 : index
    %139 = vector.load %arg6[%138, %c0_36] : memref<16x128xf32, #tpu.memory_space<vmem>>, vector<2x128xf32>
    %cst_37 = arith.constant dense<0.000000e+00> : vector<2x128xf32>
    %140 = tpu.matmul %135, %7, %cst_37 {dimension_numbers = #tpu.dot_dimension_numbers<[1], [0], [0], [1], [0, 0, 1, 1], [], []>} : vector<2x32xf32>, vector<32x128xf32>, vector<2x128xf32> -> vector<2x128xf32>
    %141 = arith.addf %139, %140 : vector<2x128xf32>
    %142 = arith.negf %141 : vector<2x128xf32>
    %143 = math.exp %142 : vector<2x128xf32>
    %cst_38 = arith.constant 1.000000e+00 : f32
    %144 = vector.broadcast %cst_38 : f32 to vector<2x128xf32>
    %145 = arith.addf %144, %143 : vector<2x128xf32>
    %146 = arith.divf %144, %145 : vector<2x128xf32>
    %147 = math.tanh %141 : vector<2x128xf32>
    %148 = vector.extract_strided_slice %146 {offsets = [0, 0], sizes = [2, 32], strides = [1, 1]} : vector<2x128xf32> to vector<2x32xf32>
    %149 = vector.extract_strided_slice %146 {offsets = [0, 32], sizes = [2, 32], strides = [1, 1]} : vector<2x128xf32> to vector<2x32xf32>
    %150 = vector.extract_strided_slice %147 {offsets = [0, 64], sizes = [2, 32], strides = [1, 1]} : vector<2x128xf32> to vector<2x32xf32>
    %151 = vector.extract_strided_slice %146 {offsets = [0, 96], sizes = [2, 32], strides = [1, 1]} : vector<2x128xf32> to vector<2x32xf32>
    %152 = arith.mulf %149, %133 : vector<2x32xf32>
    %153 = arith.mulf %148, %150 : vector<2x32xf32>
    %154 = arith.addf %152, %153 : vector<2x32xf32>
    %155 = math.tanh %154 : vector<2x32xf32>
    %156 = arith.mulf %151, %155 : vector<2x32xf32>
    %c7_i32 = arith.constant 7 : i32
    %c2_i32_39 = arith.constant 2 : i32
    %157 = arith.muli %c7_i32, %c2_i32_39 : i32
    %158 = tpu.assume_multiple %157, 2 : i32
    %159 = arith.index_cast %158 : i32 to index
    %c0_40 = arith.constant 0 : index
    %160 = vector.load %arg6[%159, %c0_40] : memref<16x128xf32, #tpu.memory_space<vmem>>, vector<2x128xf32>
    %cst_41 = arith.constant dense<0.000000e+00> : vector<2x128xf32>
    %161 = tpu.matmul %156, %7, %cst_41 {dimension_numbers = #tpu.dot_dimension_numbers<[1], [0], [0], [1], [0, 0, 1, 1], [], []>} : vector<2x32xf32>, vector<32x128xf32>, vector<2x128xf32> -> vector<2x128xf32>
    %162 = arith.addf %160, %161 : vector<2x128xf32>
    %163 = arith.negf %162 : vector<2x128xf32>
    %164 = math.exp %163 : vector<2x128xf32>
    %cst_42 = arith.constant 1.000000e+00 : f32
    %165 = vector.broadcast %cst_42 : f32 to vector<2x128xf32>
    %166 = arith.addf %165, %164 : vector<2x128xf32>
    %167 = arith.divf %165, %166 : vector<2x128xf32>
    %168 = math.tanh %162 : vector<2x128xf32>
    %169 = vector.extract_strided_slice %167 {offsets = [0, 0], sizes = [2, 32], strides = [1, 1]} : vector<2x128xf32> to vector<2x32xf32>
    %170 = vector.extract_strided_slice %167 {offsets = [0, 32], sizes = [2, 32], strides = [1, 1]} : vector<2x128xf32> to vector<2x32xf32>
    %171 = vector.extract_strided_slice %168 {offsets = [0, 64], sizes = [2, 32], strides = [1, 1]} : vector<2x128xf32> to vector<2x32xf32>
    %172 = vector.extract_strided_slice %167 {offsets = [0, 96], sizes = [2, 32], strides = [1, 1]} : vector<2x128xf32> to vector<2x32xf32>
    %173 = arith.mulf %170, %154 : vector<2x32xf32>
    %174 = arith.mulf %169, %171 : vector<2x32xf32>
    %175 = arith.addf %173, %174 : vector<2x32xf32>
    %176 = math.tanh %175 : vector<2x32xf32>
    %177 = arith.mulf %172, %176 : vector<2x32xf32>
    %c8_i32 = arith.constant 8 : i32
    %cst_43 = arith.constant 0.000000e+00 : f32
    %178 = vector.broadcast %cst_43 : f32 to vector<2x32xf32>
    %179 = arith.maximumf %177, %178 : vector<2x32xf32>
    %c0_44 = arith.constant 0 : index
    %c0_45 = arith.constant 0 : index
    %180 = vector.load %arg5[%c0_44, %c0_45] : memref<2x32xf32, #tpu.memory_space<vmem>>, vector<2x32xf32>
    tpu.vector_store %arg5[%c0_44, %c0_45], %179 {strides = array<i32>} : memref<2x32xf32, #tpu.memory_space<vmem>>, vector<2x32xf32>,
    return
  }
  func.func @transform_0(%arg0: i32) -> (i32, i32) {
    %c0_i32 = arith.constant 0 : i32
    %c0_i32_0 = arith.constant 0 : i32
    %c0_i32_1 = arith.constant 0 : i32
    return %c0_i32, %c0_i32_0 : i32, i32
  }
  func.func @transform_1(%arg0: i32) -> (i32, i32) {
    %c0_i32 = arith.constant 0 : i32
    %c0_i32_0 = arith.constant 0 : i32
    %c0_i32_1 = arith.constant 0 : i32
    return %c0_i32, %c0_i32_0 : i32, i32
  }
  func.func @transform_2(%arg0: i32) -> (i32, i32) {
    %c0_i32 = arith.constant 0 : i32
    %c0_i32_0 = arith.constant 0 : i32
    %c0_i32_1 = arith.constant 0 : i32
    return %c0_i32, %c0_i32_0 : i32, i32
  }
  func.func @transform_3(%arg0: i32) -> (i32, i32) {
    %c0_i32 = arith.constant 0 : i32
    %c0_i32_0 = arith.constant 0 : i32
    %c0_i32_1 = arith.constant 0 : i32
    return %c0_i32, %c0_i32_0 : i32, i32
  }
  func.func @transform_4(%arg0: i32) -> (i32, i32) {
    %c0_i32 = arith.constant 0 : i32
    %c0_i32_0 = arith.constant 0 : i32
    %c0_i32_1 = arith.constant 0 : i32
    return %c0_i32, %c0_i32_0 : i32, i32
  }
}

</mosaic_0001>

<bundles_post_ra>
// kernel: tpu_custom_call.1
= control target key start
LH: loop header
LB: loop body
LE: loop exit
PB: predicated region body
PF: predicated region fallthrough
CT: control target
= control target key end

     0   :  { %9 = vsyncpa [#allocation4], 0  ;;  %s1581_s0 = inlined_call_operand.hbm [shape: f32[16,32], index: 0, kind: input, shape index: {}]   ;;  %s1582_s1 = inlined_call_operand.hbm [shape: f32[32,128], index: 1, kind: input, shape index: {}]   ;;  %s1583_s2 = inlined_call_operand.hbm [shape: f32[32,128], index: 2, kind: input, shape index: {}]   ;;  %s1584_s3 = inlined_call_operand.vmem [shape: f32[1,128], index: 3, kind: input, shape index: {}]   ;;  %s1585_s4 = inlined_call_operand.hbm [shape: f32[2,32], index: 4, kind: output, shape index: {}]  }
   0x1   :  { %10 = vsyncpa [#allocation7], 0 }
   0x2   :  { %11 = vsyncpa [#allocation5], 0  ;;  %s1384_s15 = smov [#allocation6]   ;;  %s1385_s17 = smov [#allocation3]  }
   0x3   :  { %s29_s16 = sshll.u32 %s1384_s15, 4  ;;  %s17_s18 = sshll.u32 %s1385_s17, 4  ;;  %s30_s16 = int_to_ptr.vmem [resolvable:$true] %s29_s16  ;;  %s1420_s18 = int_to_ptr.vmem [resolvable:$true] %s17_s18 }
   0x4   :  { %s1290_s21 = scalar_lea.hbm %s1582_s1, 512 }
   0x5   :  { %p1291_p0 = scmp.ne.s32.totalorder %s1582_s1, %s1290_s21  ;;  %p1294_p1 = scmp.lt.u32.totalorder %s1290_s21, %s1582_s1 }
   0x7   :  { %p1296_p2 = pnand %p1294_p1, %p1291_p0 }
   0x9   :  { %1299 = shalt.err (!%p1296_p2)
}
   0xa   :  { %s1300_s26 = scalar_lea.vmem %s30_s16, 512  ;;  %p1305_p4 = scmp.lt.s32.totalorder %s30_s16, %s30_s16 }
   0xb   :  { %p1301_p3 = scmp.ne.s32.totalorder %s30_s16, %s1300_s26  ;;  %p1306_p5 = scmp.lt.s32.totalorder %s1300_s26, %s1300_s26 }
   0xd   :  { %p1307_p6 = por %p1306_p5, %p1305_p4 }
   0xf   :  { %p1308_p7 = pnand %p1307_p6, %p1301_p3 }
  0x11   :  { %1311 = shalt.err (!%p1308_p7)
}
  0x12   :  { %s1386_s27 = smov 128   ;;  %s1387_s28 = smov 8  }
  0x13   :  { %35 = dma.hbm_to_vmem [thread:$0]  %s1582_s1, 512, %s30_s16, [#allocation7], %s1386_s27, %s1386_s27, %s1387_s28  }
  0x14   :  { %s1312_s7 = scalar_lea.hbm %s1581_s0, 256 }
  0x15   :  { %p1313_p8 = scmp.ne.s32.totalorder %s1581_s0, %s1312_s7  ;;  %p1316_p9 = scmp.lt.u32.totalorder %s1312_s7, %s1581_s0 }
  0x17   :  { %p1318_p10 = pnand %p1316_p9, %p1313_p8 }
  0x19   :  { %1321 = shalt.err (!%p1318_p10)
}
  0x1a   :  { %s1322_s12 = scalar_lea.vmem %s1420_s18, 256  ;;  %p1327_p12 = scmp.lt.s32.totalorder %s1420_s18, %s1420_s18 }
  0x1b   :  { %p1323_p11 = scmp.ne.s32.totalorder %s1420_s18, %s1322_s12  ;;  %p1328_p13 = scmp.lt.s32.totalorder %s1322_s12, %s1322_s12 }
  0x1d   :  { %p1329_p0 = por %p1328_p13, %p1327_p12 }
  0x1f   :  { %p1330_p1 = pnand %p1329_p0, %p1323_p11 }
  0x21   :  { %1333 = shalt.err (!%p1330_p1)
}
  0x22   :  { %23 = dma.hbm_to_vmem [thread:$0]  %s1581_s0, 256, %s1420_s18, [#allocation4], %s1386_s27, %s1386_s27, %s1387_s28  }
  0x23   :  { %s1388_s14 = smov [#allocation8]   ;;  %s1334_s19 = scalar_lea.hbm %s1583_s2, 512 }
  0x24   :  { %s41_s15 = sshll.u32 %s1388_s14, 4  ;;  %p1335_p2 = scmp.ne.s32.totalorder %s1583_s2, %s1334_s19  ;;  %s42_s15 = int_to_ptr.vmem [resolvable:$true] %s41_s15 }
  0x25   :  { %p1338_p3 = scmp.lt.u32.totalorder %s1334_s19, %s1583_s2 }
  0x27   :  { %p1340_p4 = pnand %p1338_p3, %p1335_p2 }
  0x29   :  { %1343 = shalt.err (!%p1340_p4)
}
  0x2a   :  { %s1344_s24 = scalar_lea.vmem %s42_s15, 512  ;;  %p1349_p6 = scmp.lt.s32.totalorder %s42_s15, %s42_s15 }
  0x2b   :  { %p1345_p5 = scmp.ne.s32.totalorder %s42_s15, %s1344_s24  ;;  %p1350_p7 = scmp.lt.s32.totalorder %s1344_s24, %s1344_s24 }
  0x2d   :  { %p1351_p8 = por %p1350_p7, %p1349_p6 }
  0x2f   :  { %p1352_p9 = pnand %p1351_p8, %p1345_p5 }
  0x31   :  { %1355 = shalt.err (!%p1352_p9)
}
  0x32   :  { %47 = dma.hbm_to_vmem [thread:$0]  %s1583_s2, 512, %s42_s15, [#allocation7], %s1386_s27, %s1386_s27, %s1387_s28  }
  0x33   :  { %1378 = dma.done.wait [#allocation4], 256  }
  0x34   :  { %1379 = vsyncadd [#allocation4], 4294967040 }
  0x35   :  { %1380 = dma.done.wait [#allocation7], 1024  }
  0x36   :  { %1381 = vsyncadd [#allocation7], 4294966272  ;;  %v1389_v0 = vmov 0.0|0.0   ;;  %vm1390_vm0 = vmmov 0   ;;  %v1391_v1 = vmov 0.0   ;;  %vm72_vm1 = vcmask 261120  }
  0x37   :  { %1167 = vmatprep.subr.bf16.mxu1 %v1389_v0  ;;  %1079 = vmatprep.mubr.msk.f32.mxu1 %vm1390_vm0, %v1391_v1  ;;  %v61_v2 = vld [vmem:[#allocation6] sm:$0xff]  ;;  %v62_v3 = vld [vmem:[#allocation6 + $0x8] sm:$0xff]  ;;  %v63_v4 = vld [vmem:[#allocation6 + $0x10] sm:$0xff]  ;;  %s1392_s26 = smov 64   ;;  %s1394_s27 = smov [#allocation9]   ;;  %vm978_vm2 = vcmask 254976  }
  0x38   :  { %v1159_v5 = vpack.c.bf16 %v62_v3, %v61_v2  ;;  %v64_v6 = vld [vmem:[#allocation6 + $0x18] sm:$0xff]  ;;  %v59_v7 = vld [vmem:[#allocation3] sm:$0xff]  ;;  %v156_v9 = vld [vmem:[#allocation8] sm:$0xff]  ;;  %s986_s28 = sshll.u32 %s1394_s27, 4  ;;  %s987_s28 = int_to_ptr.vmem [resolvable:$true] %s986_s28 }
  0x39   :  { %v1163_v8 = vpack.c.bf16 %v64_v6, %v63_v4  ;;  %1068 = vmatprep.mubr.msk.f32.mxu0 %vm72_vm1, %v59_v7  ;;  %v157_v10 = vld [vmem:[#allocation8 + $0x8] sm:$0xff]  ;;  %v158_v11 = vld [vmem:[#allocation8 + $0x10] sm:$0xff]  ;;  %v159_v13 = vld [vmem:[#allocation8 + $0x18] sm:$0xff]  ;;  %s1356_s29 = scalar_lea.vmem %s987_s28, 32  ;;  %p1361_p11 = scmp.lt.s32.totalorder %s987_s28, %s987_s28 }
  0x3a   :  { %1160 = vmatprep.subr.bf16.mxu0 %v1159_v5  ;;  %v1476_v12 = vpack.c.bf16 %v157_v10, %v156_v9  ;;  %v1479_v14 = vpack.c.bf16 %v159_v13, %v158_v11  ;;  %v60_v15 = vld [vmem:[#allocation3 + $0x8] sm:$0xff]  ;;  %v996_v16 = vld [vmem:[%s1584_s3] ss:$0 sm:$0xff]  ;;  %s1393_s3 = smov 32   ;;  %p1357_p10 = scmp.ne.s32.totalorder %s987_s28, %s1356_s29 }
  0x3b   :  { %1162 = vmatpush3.bf16.msra.mxu0 %v1159_v5  ;;  %p1362_p12 = scmp.lt.s32.totalorder %s1356_s29, %s1356_s29 }
  0x3c   :  { %1164 = vmatprep.subr.bf16.mxu0 %v1163_v8  ;;  %1169 = vmatpush3.bf16.msra.mxu1 %v1476_v12 }
  0x3d   :  { %1170 = vmatprep.subr.bf16.mxu1 %v1389_v0  ;;  %p1363_p13 = por %p1362_p12, %p1361_p11 }
  0x3f   :  { %1166 = vmatpush3.bf16.msra.mxu0 %v1163_v8  ;;  %p1364_p0 = pnand %p1363_p13, %p1357_p10 }
  0x40   :  { %1172 = vmatpush3.bf16.msra.mxu1 %v1479_v14  ;;  %1173 = vmatprep.subr.bf16.mxu0 %v1389_v0 }
  0x41   :  { %1179 = vmatprep.subr.bf16.mxu1 %v1389_v0 }
  0x42   :  { %1069 = vmatmul.mubr.msk.f32.vlgmr.msra.gmra.mrb[0].mxu0 %vm72_vm1, %v60_v15 }
  0x43   :  { %1080 = vmatmul.mubr.f32.vlgmr.msra.gmra.mrb[0].mxu1 %v1391_v1  ;;  %1175 = vmatpush3.bf16.msra.mxu0 %v1476_v12 }
  0x44   :  { %1176 = vmatprep.subr.bf16.mxu0 %v1389_v0  ;;  %1090 = vmatprep.mubr.msk.f32.mxu0 %vm1390_vm0, %v1391_v1 }
  0x45   :  { %1181 = vmatpush3.bf16.msra.mxu1 %v1476_v12  ;;  %1101 = vmatprep.mubr.msk.f32.mxu1 %vm1390_vm0, %v1391_v1 }
  0x46   :  { %1182 = vmatprep.subr.bf16.mxu1 %v1389_v0 }
  0x47   :  { %1178 = vmatpush3.bf16.msra.mxu0 %v1479_v14 }
  0x48   :  { %1185 = vmatprep.subr.bf16.mxu0 %v1389_v0 }
  0x49   :  { %1184 = vmatpush3.bf16.msra.mxu1 %v1479_v14 }
  0x4a   :  { %1191 = vmatprep.subr.bf16.mxu1 %v1389_v0 }
 0x115   :  { %v1070_v17 = vpop.f32.mrb[0].mxu0 }
 0x116   :  { %v151_v18 = vadd.f32 %v1070_v17, %v996_v16  ;;  %v145_v19 = vpop.f32.mrb[1].mxu0  ;;  %v230_v20 = vpop.f32.mrb[0].mxu1 }
 0x117   :  { %v146_v21 = vadd.f32 %v996_v16, %v145_v19  ;;  %v1081_v22 = vpop.f32.mrb[1].mxu1 }
 0x118   :  { %155 = vst [vmem:[#allocation2 + $0x8] sm:$0xff] %v151_v18 }
 0x119   :  { %154 = vst [vmem:[#allocation2] sm:$0xff] %v146_v21 }
 0x120   :  { %v160_v23 = vld [vmem:[#allocation2] sm:$0x3]  ;;  %v260_v39 = vld [vmem:[#allocation2 + $0x2] sm:$0x3]  ;;  %v362_v57 = vld [vmem:[#allocation2 + $0x4] sm:$0x3] }
 0x121   :  { %v234_v24 = vadd.f32 %v230_v20, %v160_v23  ;;  %v464_v15 = vld [vmem:[#allocation2 + $0x6] sm:$0x3] }
 0x123   :  { %1226 = vtanh.f32 %v234_v24  ;;  %v999_v26 = vmul.f32 -1.442695, %v234_v24 }
 0x125   :  { %1228 = vpow2.f32 %v999_v26 }
 0x12d   :  { %v1227_v25 = vpop.eup %1226 }
 0x12e   :  { %244 = vrot.lane.b32.xlu0 %v1227_v25, %s1392_s26 }
 0x12f   :  { %v1229_v27 = vpop.eup %1228 }
 0x130   :  { %v238_v28 = vadd.f32 1.0, %v1229_v27 }
 0x132   :  { %1230 = vrcp.f32 %v238_v28 }
 0x13c   :  { %v1231_v29 = vpop.eup %1230 }
 0x13d   :  { %v242_v32 = vmul.f32 0.0, %v1231_v29 }
 0x1a0   :  { %v245_v30 = vpop.permute.xlu0 %244 }
 0x1a1   :  { %v247_v31 = vmul.f32 %v1231_v29, %v245_v30 }
 0x1a3   :  { %249 = vrot.lane.b32.xlu0 %v247_v31, %s1393_s3 }
 0x215   :  { %v250_v33 = vpop.permute.xlu0 %249 }
 0x216   :  { %v252_v34 = vadd.f32 %v250_v33, %v242_v32  ;;  %v566_v33 = vld [vmem:[#allocation2 + $0x8] sm:$0x3] }
 0x218   :  { %1232 = vtanh.f32 %v252_v34 }
 0x222   :  { %v1233_v35 = vpop.eup %1232 }
 0x223   :  { %255 = vrot.lane.b32.xlu1 %v1233_v35, %s1392_s26 }
 0x295   :  { %v256_v36 = vpop.permute.xlu1 %255 }
 0x296   :  { %v258_v37 = vmul.f32 %v1231_v29, %v256_v36 }
 0x298   :  { %262 = vrot.lane.b32.xlu1 %v258_v37, %s1393_s3 }
 0x30a   :  { %v263_v38 = vpop.permute.xlu1 %262 }
 0x30b   :  { %1091 = vmatmul.mubr.msk.f32.vlgmr.msra.gmra.mrb[2].mxu0 %vm72_vm1, %v263_v38 }
 0x30c   :  { %1187 = vmatpush3.bf16.msra.mxu0 %v1476_v12  ;;  %1112 = vmatprep.mubr.msk.f32.mxu0 %vm1390_vm0, %v1391_v1 }
 0x30d   :  { %1188 = vmatprep.subr.bf16.mxu0 %v1389_v0 }
 0x310   :  { %1190 = vmatpush3.bf16.msra.mxu0 %v1479_v14 }
 0x311   :  { %1197 = vmatprep.subr.bf16.mxu0 %v1389_v0 }
 0x3de   :  { %v332_v40 = vpop.f32.mrb[2].mxu0 }
 0x3df   :  { %v336_v41 = vadd.f32 %v332_v40, %v260_v39  ;;  %v1092_v42 = vpop.f32.mrb[3].mxu0 }
 0x3e1   :  { %1234 = vtanh.f32 %v336_v41  ;;  %v1001_v44 = vmul.f32 -1.442695, %v336_v41 }
 0x3e3   :  { %1236 = vpow2.f32 %v1001_v44 }
 0x3eb   :  { %v1235_v43 = vpop.eup %1234 }
 0x3ec   :  { %346 = vrot.lane.b32.xlu0 %v1235_v43, %s1392_s26 }
 0x3ed   :  { %v1237_v45 = vpop.eup %1236 }
 0x3ee   :  { %v340_v46 = vadd.f32 1.0, %v1237_v45 }
 0x3f0   :  { %1238 = vrcp.f32 %v340_v46 }
 0x3fa   :  { %v1239_v47 = vpop.eup %1238 }
 0x3fb   :  { %v344_v50 = vmul.f32 %v1239_v47, %v252_v34 }
 0x45e   :  { %v347_v48 = vpop.permute.xlu0 %346 }
 0x45f   :  { %v349_v49 = vmul.f32 %v1239_v47, %v347_v48 }
 0x461   :  { %351 = vrot.lane.b32.xlu1 %v349_v49, %s1393_s3 }
 0x4d3   :  { %v352_v51 = vpop.permute.xlu1 %351 }
 0x4d4   :  { %v354_v52 = vadd.f32 %v352_v51, %v344_v50  ;;  %v668_v51 = vld [vmem:[#allocation2 + $0xa] sm:$0x3] }
 0x4d6   :  { %1240 = vtanh.f32 %v354_v52 }
 0x4e0   :  { %v1241_v53 = vpop.eup %1240 }
 0x4e1   :  { %357 = vrot.lane.b32.xlu0 %v1241_v53, %s1392_s26 }
 0x553   :  { %v358_v54 = vpop.permute.xlu0 %357 }
 0x554   :  { %v360_v55 = vmul.f32 %v1239_v47, %v358_v54 }
 0x556   :  { %364 = vrot.lane.b32.xlu1 %v360_v55, %s1393_s3 }
 0x5c8   :  { %v365_v56 = vpop.permute.xlu1 %364 }
 0x5c9   :  { %1102 = vmatmul.mubr.msk.f32.vlgmr.msra.gmra.mrb[2].mxu1 %vm72_vm1, %v365_v56 }
 0x5ca   :  { %1193 = vmatpush3.bf16.msra.mxu1 %v1476_v12  ;;  %1123 = vmatprep.mubr.msk.f32.mxu1 %vm1390_vm0, %v1391_v1 }
 0x5cb   :  { %1194 = vmatprep.subr.bf16.mxu1 %v1389_v0 }
 0x5ce   :  { %1196 = vmatpush3.bf16.msra.mxu1 %v1479_v14 }
 0x5cf   :  { %1203 = vmatprep.subr.bf16.mxu1 %v1389_v0 }
 0x69c   :  { %v434_v58 = vpop.f32.mrb[2].mxu1 }
 0x69d   :  { %v438_v59 = vadd.f32 %v434_v58, %v362_v57  ;;  %v1103_v60 = vpop.f32.mrb[3].mxu1 }
 0x69f   :  { %1242 = vtanh.f32 %v438_v59  ;;  %v1003_v62 = vmul.f32 -1.442695, %v438_v59 }
 0x6a1   :  { %1244 = vpow2.f32 %v1003_v62 }
 0x6a9   :  { %v1243_v61 = vpop.eup %1242 }
 0x6aa   :  { %448 = vrot.lane.b32.xlu0 %v1243_v61, %s1392_s26 }
 0x6ab   :  { %v1245_v63 = vpop.eup %1244 }
 0x6ac   :  { %v442_v2 = vadd.f32 1.0, %v1245_v63 }
 0x6ae   :  { %1246 = vrcp.f32 %v442_v2 }
 0x6b8   :  { %v1247_v3 = vpop.eup %1246 }
 0x6b9   :  { %v446_v6 = vmul.f32 %v1247_v3, %v354_v52 }
 0x71c   :  { %v449_v4 = vpop.permute.xlu0 %448 }
 0x71d   :  { %v451_v5 = vmul.f32 %v1247_v3, %v449_v4 }
 0x71f   :  { %453 = vrot.lane.b32.xlu1 %v451_v5, %s1393_s3 }
 0x791   :  { %v454_v7 = vpop.permute.xlu1 %453 }
 0x792   :  { %v456_v8 = vadd.f32 %v454_v7, %v446_v6 }
 0x794   :  { %1248 = vtanh.f32 %v456_v8 }
 0x79e   :  { %v1249_v9 = vpop.eup %1248 }
 0x79f   :  { %459 = vrot.lane.b32.xlu0 %v1249_v9, %s1392_s26 }
 0x811   :  { %v460_v10 = vpop.permute.xlu0 %459 }
 0x812   :  { %v462_v11 = vmul.f32 %v1247_v3, %v460_v10  ;;  %v770_v3 = vld [vmem:[#allocation2 + $0xc] sm:$0x3] }
 0x814   :  { %466 = vrot.lane.b32.xlu1 %v462_v11, %s1393_s3 }
 0x886   :  { %v467_v13 = vpop.permute.xlu1 %466 }
 0x887   :  { %1113 = vmatmul.mubr.msk.f32.vlgmr.msra.gmra.mrb[4].mxu0 %vm72_vm1, %v467_v13 }
 0x888   :  { %1199 = vmatpush3.bf16.msra.mxu0 %v1476_v12  ;;  %1134 = vmatprep.mubr.msk.f32.mxu0 %vm1390_vm0, %v1391_v1 }
 0x889   :  { %1200 = vmatprep.subr.bf16.mxu0 %v1389_v0 }
 0x88c   :  { %1202 = vmatpush3.bf16.msra.mxu0 %v1479_v14 }
 0x88d   :  { %1209 = vmatprep.subr.bf16.mxu0 %v1389_v0 }
 0x95a   :  { %v536_v16 = vpop.f32.mrb[4].mxu0 }
 0x95b   :  { %v540_v17 = vadd.f32 %v536_v16, %v464_v15  ;;  %v1114_v18 = vpop.f32.mrb[5].mxu0 }
 0x95d   :  { %1250 = vtanh.f32 %v540_v17  ;;  %v1005_v20 = vmul.f32 -1.442695, %v540_v17 }
 0x95f   :  { %1252 = vpow2.f32 %v1005_v20 }
 0x967   :  { %v1251_v19 = vpop.eup %1250 }
 0x968   :  { %550 = vrot.lane.b32.xlu0 %v1251_v19, %s1392_s26 }
 0x969   :  { %v1253_v21 = vpop.eup %1252 }
 0x96a   :  { %v544_v22 = vadd.f32 1.0, %v1253_v21 }
 0x96c   :  { %1254 = vrcp.f32 %v544_v22 }
 0x976   :  { %v1255_v23 = vpop.eup %1254 }
 0x977   :  { %v548_v26 = vmul.f32 %v1255_v23, %v456_v8 }
 0x9da   :  { %v551_v24 = vpop.permute.xlu0 %550 }
 0x9db   :  { %v553_v25 = vmul.f32 %v1255_v23, %v551_v24 }
 0x9dd   :  { %555 = vrot.lane.b32.xlu1 %v553_v25, %s1393_s3 }
 0xa4f   :  { %v556_v27 = vpop.permute.xlu1 %555 }
 0xa50   :  { %v558_v28 = vadd.f32 %v556_v27, %v548_v26 }
 0xa52   :  { %1256 = vtanh.f32 %v558_v28 }
 0xa5c   :  { %v1257_v29 = vpop.eup %1256 }
 0xa5d   :  { %561 = vrot.lane.b32.xlu0 %v1257_v29, %s1392_s26 }
 0xacf   :  { %v562_v30 = vpop.permute.xlu0 %561 }
 0xad0   :  { %v564_v31 = vmul.f32 %v1255_v23, %v562_v30  ;;  %v872_v23 = vld [vmem:[#allocation2 + $0xe] sm:$0x3] }
 0xad2   :  { %568 = vrot.lane.b32.xlu1 %v564_v31, %s1393_s3 }
 0xb44   :  { %v569_v32 = vpop.permute.xlu1 %568 }
 0xb45   :  { %1124 = vmatmul.mubr.msk.f32.vlgmr.msra.gmra.mrb[4].mxu1 %vm72_vm1, %v569_v32 }
 0xb46   :  { %1205 = vmatpush3.bf16.msra.mxu1 %v1476_v12  ;;  %1145 = vmatprep.mubr.msk.f32.mxu1 %vm1390_vm0, %v1391_v1 }
 0xb47   :  { %1206 = vmatprep.subr.bf16.mxu1 %v1389_v0 }
 0xb4a   :  { %1208 = vmatpush3.bf16.msra.mxu1 %v1479_v14 }
 0xc18   :  { %v638_v34 = vpop.f32.mrb[4].mxu1 }
 0xc19   :  { %v642_v35 = vadd.f32 %v638_v34, %v566_v33  ;;  %v1125_v36 = vpop.f32.mrb[5].mxu1 }
 0xc1b   :  { %1258 = vtanh.f32 %v642_v35  ;;  %v1007_v38 = vmul.f32 -1.442695, %v642_v35 }
 0xc1d   :  { %1260 = vpow2.f32 %v1007_v38 }
 0xc25   :  { %v1259_v37 = vpop.eup %1258 }
 0xc26   :  { %652 = vrot.lane.b32.xlu0 %v1259_v37, %s1392_s26 }
 0xc27   :  { %v1261_v39 = vpop.eup %1260 }
 0xc28   :  { %v646_v40 = vadd.f32 1.0, %v1261_v39 }
 0xc2a   :  { %1262 = vrcp.f32 %v646_v40 }
 0xc34   :  { %v1263_v41 = vpop.eup %1262 }
 0xc35   :  { %v650_v44 = vmul.f32 %v1263_v41, %v558_v28 }
 0xc98   :  { %v653_v42 = vpop.permute.xlu0 %652 }
 0xc99   :  { %v655_v43 = vmul.f32 %v1263_v41, %v653_v42 }
 0xc9b   :  { %657 = vrot.lane.b32.xlu1 %v655_v43, %s1393_s3 }
 0xd0d   :  { %v658_v45 = vpop.permute.xlu1 %657 }
 0xd0e   :  { %v660_v46 = vadd.f32 %v658_v45, %v650_v44 }
 0xd10   :  { %1264 = vtanh.f32 %v660_v46 }
 0xd1a   :  { %v1265_v47 = vpop.eup %1264 }
 0xd1b   :  { %663 = vrot.lane.b32.xlu0 %v1265_v47, %s1392_s26 }
 0xd8d   :  { %v664_v48 = vpop.permute.xlu0 %663 }
 0xd8e   :  { %v666_v49 = vmul.f32 %v1263_v41, %v664_v48 }
 0xd90   :  { %670 = vrot.lane.b32.xlu1 %v666_v49, %s1393_s3 }
 0xe02   :  { %v671_v50 = vpop.permute.xlu1 %670 }
 0xe03   :  { %1135 = vmatmul.mubr.msk.f32.vlgmr.msra.gmra.mrb[6].mxu0 %vm72_vm1, %v671_v50 }
 0xe04   :  { %1211 = vmatpush3.bf16.msra.mxu0 %v1476_v12  ;;  %1156 = vmatprep.mubr.msk.f32.mxu0 %vm1390_vm0, %v1391_v1 }
 0xe05   :  { %1212 = vmatprep.subr.bf16.mxu0 %v1389_v0 }
 0xe08   :  { %1214 = vmatpush3.bf16.msra.mxu0 %v1479_v14 }
 0xed6   :  { %v740_v52 = vpop.f32.mrb[6].mxu0 }
 0xed7   :  { %v744_v53 = vadd.f32 %v740_v52, %v668_v51  ;;  %v1136_v54 = vpop.f32.mrb[7].mxu0 }
 0xed9   :  { %1266 = vtanh.f32 %v744_v53  ;;  %v1009_v56 = vmul.f32 -1.442695, %v744_v53 }
 0xedb   :  { %1268 = vpow2.f32 %v1009_v56 }
 0xee3   :  { %v1267_v55 = vpop.eup %1266 }
 0xee4   :  { %754 = vrot.lane.b32.xlu0 %v1267_v55, %s1392_s26 }
 0xee5   :  { %v1269_v57 = vpop.eup %1268 }
 0xee6   :  { %v748_v58 = vadd.f32 1.0, %v1269_v57 }
 0xee8   :  { %1270 = vrcp.f32 %v748_v58 }
 0xef2   :  { %v1271_v12 = vpop.eup %1270 }
 0xef3   :  { %v752_v0 = vmul.f32 %v1271_v12, %v660_v46 }
 0xf56   :  { %v755_v59 = vpop.permute.xlu0 %754 }
 0xf57   :  { %v757_v1 = vmul.f32 %v1271_v12, %v755_v59 }
 0xf59   :  { %759 = vrot.lane.b32.xlu1 %v757_v1, %s1393_s3 }
 0xfcb   :  { %v760_v14 = vpop.permute.xlu1 %759 }
 0xfcc   :  { %v762_v60 = vadd.f32 %v760_v14, %v752_v0 }
 0xfce   :  { %1272 = vtanh.f32 %v762_v60 }
 0xfd8   :  { %v1273_v61 = vpop.eup %1272 }
 0xfd9   :  { %765 = vrot.lane.b32.xlu0 %v1273_v61, %s1392_s26 }
0x104b   :  { %v766_v62 = vpop.permute.xlu0 %765 }
0x104c   :  { %v768_v63 = vmul.f32 %v1271_v12, %v766_v62 }
0x104e   :  { %772 = vrot.lane.b32.xlu1 %v768_v63, %s1393_s3 }
0x10c0   :  { %v773_v2 = vpop.permute.xlu1 %772 }
0x10c1   :  { %1146 = vmatmul.mubr.msk.f32.vlgmr.msra.gmra.mrb[6].mxu1 %vm72_vm1, %v773_v2 }
0x1194   :  { %v842_v4 = vpop.f32.mrb[6].mxu1 }
0x1195   :  { %v846_v5 = vadd.f32 %v842_v4, %v770_v3  ;;  %v1147_v6 = vpop.f32.mrb[7].mxu1 }
0x1197   :  { %1274 = vtanh.f32 %v846_v5  ;;  %v1011_v8 = vmul.f32 -1.442695, %v846_v5 }
0x1199   :  { %1276 = vpow2.f32 %v1011_v8 }
0x11a1   :  { %v1275_v7 = vpop.eup %1274 }
0x11a2   :  { %856 = vrot.lane.b32.xlu0 %v1275_v7, %s1392_s26 }
0x11a3   :  { %v1277_v9 = vpop.eup %1276 }
0x11a4   :  { %v850_v10 = vadd.f32 1.0, %v1277_v9 }
0x11a6   :  { %1278 = vrcp.f32 %v850_v10 }
0x11b0   :  { %v1279_v11 = vpop.eup %1278 }
0x11b1   :  { %v854_v16 = vmul.f32 %v1279_v11, %v762_v60 }
0x1214   :  { %v857_v13 = vpop.permute.xlu0 %856 }
0x1215   :  { %v859_v15 = vmul.f32 %v1279_v11, %v857_v13 }
0x1217   :  { %861 = vrot.lane.b32.xlu1 %v859_v15, %s1393_s3 }
0x1289   :  { %v862_v17 = vpop.permute.xlu1 %861 }
0x128a   :  { %v864_v18 = vadd.f32 %v862_v17, %v854_v16 }
0x128c   :  { %1280 = vtanh.f32 %v864_v18 }
0x1296   :  { %v1281_v19 = vpop.eup %1280 }
0x1297   :  { %867 = vrot.lane.b32.xlu0 %v1281_v19, %s1392_s26 }
0x1309   :  { %v868_v20 = vpop.permute.xlu0 %867 }
0x130a   :  { %v870_v21 = vmul.f32 %v1279_v11, %v868_v20 }
0x130c   :  { %874 = vrot.lane.b32.xlu1 %v870_v21, %s1393_s3 }
0x137e   :  { %v875_v22 = vpop.permute.xlu1 %874 }
0x137f   :  { %1157 = vmatmul.mubr.msk.f32.vlgmr.msra.gmra.mrb[8].mxu0 %vm72_vm1, %v875_v22 }
0x1452   :  { %v944_v24 = vpop.f32.mrb[8].mxu0 }
0x1453   :  { %v948_v25 = vadd.f32 %v944_v24, %v872_v23  ;;  %v1158_v26 = vpop.f32.mrb[9].mxu0 }
0x1455   :  { %1282 = vtanh.f32 %v948_v25  ;;  %v1013_v28 = vmul.f32 -1.442695, %v948_v25 }
0x1457   :  { %1284 = vpow2.f32 %v1013_v28 }
0x145f   :  { %v1283_v27 = vpop.eup %1282 }
0x1460   :  { %958 = vrot.lane.b32.xlu0 %v1283_v27, %s1392_s26 }
0x1461   :  { %v1285_v29 = vpop.eup %1284 }
0x1462   :  { %v952_v30 = vadd.f32 1.0, %v1285_v29 }
0x1464   :  { %1286 = vrcp.f32 %v952_v30 }
0x146e   :  { %v1287_v31 = vpop.eup %1286 }
0x146f   :  { %v956_v34 = vmul.f32 %v1287_v31, %v864_v18 }
0x14d2   :  { %v959_v32 = vpop.permute.xlu0 %958 }
0x14d3   :  { %v961_v33 = vmul.f32 %v1287_v31, %v959_v32 }
0x14d5   :  { %963 = vrot.lane.b32.xlu1 %v961_v33, %s1393_s3 }
0x1547   :  { %v964_v35 = vpop.permute.xlu1 %963 }
0x1548   :  { %v966_v36 = vadd.f32 %v964_v35, %v956_v34 }
0x154a   :  { %1288 = vtanh.f32 %v966_v36 }
0x1554   :  { %v1289_v37 = vpop.eup %1288 }
0x1555   :  { %969 = vrot.lane.b32.xlu0 %v1289_v37, %s1392_s26 }
0x15c7   :  { %v970_v38 = vpop.permute.xlu0 %969 }
0x15c8   :  { %v972_v39 = vmul.f32 %v1287_v31, %v970_v38 }
0x15ca   :  { %v973_v40 = vmax.f32 %v972_v39, 0.0 }
0x15cc   :  { %975 = vrot.lane.b32.xlu1 %v973_v40, %s1393_s3 }
0x163e   :  { %v976_v41 = vpop.permute.xlu1 %975 }
0x163f   :  { %979 = vst.msk [vmem:[#allocation9] sm:$0x3] %vm978_vm2, %v976_v41 }
0x1640   :  { %1367 = shalt.err (!%p1364_p0)
}
0x1641   :  { %s1368_s6 = scalar_lea.hbm %s1585_s4, 32 }
0x1642   :  { %p1369_p1 = scmp.ne.s32.totalorder %s1585_s4, %s1368_s6  ;;  %p1372_p2 = scmp.lt.u32.totalorder %s1368_s6, %s1585_s4 }
0x1644   :  { %p1374_p3 = pnand %p1372_p2, %p1369_p1 }
0x1646   :  { %1377 = shalt.err (!%p1374_p3)
}
0x1647   :  { %989 = dma.vmem_to_hbm [thread:$0]  %s987_s28, 32, %s1585_s4, [#allocation5]  }
0x1648   :  { %1382 = dma.done.wait [#allocation5], 32  }
0x1649   :  { %1383 = vsyncadd [#allocation5], 4294967264 }
0x164a   :  { %993 = vsyncpa [#allocation4], 1 }
0x164b   :  { %994 = vsyncpa [#allocation7], 1 }
0x164c   :  { %995 = vsyncpa [#allocation5], 1 }

</bundles_post_ra>
